<compile_context>
chip_gen: v5e
topology: v5e:2x2
jax: 0.10.0
libtpu: 0.0.40
codegen_flags: <defaults>
</compile_context>

<pallas_src>
import jax
import jax.numpy as jnp
from jax.experimental import pallas as pl
from jax.experimental.pallas import tpu as pltpu


def _seq_kernel(obs_ref, task_ref, h0_ref,
                wi_ref, wh_ref, ws_ref, wo_ref, b_pre_ref, bo_ref,
                out_ref, hseq_ref,
                h_scr, const_scr):
    t = pl.program_id(0)

    @pl.when(t == 0)
    def _():
        # Per-sequence constants: initial hidden state, and the fixed task
        # projection folded together with all three pre-activation biases.
        h_scr[...] = h0_ref[...]
        const_scr[...] = (
            jnp.dot(task_ref[...], ws_ref[...], preferred_element_type=jnp.float32)
            + b_pre_ref[...]
        )

    pre = (
        jnp.dot(obs_ref[...], wi_ref[...], preferred_element_type=jnp.float32)
        + jnp.dot(h_scr[...], wh_ref[...], preferred_element_type=jnp.float32)
        + const_scr[...]
    )
    rnn_h = jnp.maximum(pre, 0.0)            # ReLU on the VPU
    h_scr[...] = rnn_h                       # exact f32 recurrent carry
    hseq_ref[...] = rnn_h.astype(hseq_ref.dtype)
    out_ref[...] = (
        jnp.dot(rnn_h, wo_ref[...], preferred_element_type=jnp.float32)
        + bo_ref[...]
    ).astype(out_ref.dtype)


def pack_params(params):
    """Pack once at init (NOT per forward): pre-sum the pre-activation biases."""
    return {
        "wi": params["wi"],
        "wh": params["wh"],
        "ws": params["ws"],
        "wo": params["wo"],
        "b_pre": params["bi"] + params["bh"] + params["bs"],
        "bo": params["bo"],
    }


@jax.jit
def task_switcher_forward_sequence(obs_seq, h0, task_ohe, packed):
    """obs_seq: (T, B, obs); h0: (B, H); task_ohe: (B, num_tasks) (fixed over T)."""
    T, B, OBS = obs_seq.shape
    H = packed["wh"].shape[0]
    O = packed["wo"].shape[1]
    NT = packed["ws"].shape[0]

    resident = lambda t: (0, 0)       # same block every step -> stays in VMEM
    per_step = lambda t: (t, 0, 0)    # streamed / written per time step

    out_seq, h_seq = pl.pallas_call(
        _seq_kernel,
        grid=(T,),
        in_specs=[
            pl.BlockSpec((None, B, OBS), per_step),   # obs[t]
            pl.BlockSpec((B, NT), resident),          # task one-hot (constant)
            pl.BlockSpec((B, H), resident),           # h0
            pl.BlockSpec((OBS, H), resident),         # Wi
            pl.BlockSpec((H, H), resident),           # Wh
            pl.BlockSpec((NT, H), resident),          # Ws
            pl.BlockSpec((H, O), resident),           # Wo
            pl.BlockSpec((1, H), resident),           # bi + bh + bs
            pl.BlockSpec((1, O), resident),           # bo
        ],
        out_specs=[
            pl.BlockSpec((None, B, O), per_step),     # out[t]
            pl.BlockSpec((None, B, H), per_step),     # rnn_h[t]
        ],
        out_shape=[
            jax.ShapeDtypeStruct((T, B, O), jnp.float32),
            jax.ShapeDtypeStruct((T, B, H), jnp.float32),
        ],
        scratch_shapes=[
            pltpu.VMEM((B, H), jnp.float32),          # carried hidden state
            pltpu.VMEM((B, H), jnp.float32),          # task proj + biases
        ],
        compiler_params=pltpu.CompilerParams(
            dimension_semantics=("arbitrary",)),      # sequential recurrence
    )(obs_seq, task_ohe, h0,
      packed["wi"], packed["wh"], packed["ws"], packed["wo"],
      packed["b_pre"], packed["bo"])
    return out_seq, h_seq


def task_switcher_forward(obs, h, task_ohe, packed):
    """Single-step forward == T=1 sequence (same fused kernel)."""
    out_seq, h_seq = task_switcher_forward_sequence(obs[None], h, task_ohe, packed)
    return out_seq[0], h_seq[0]


def init_params(key, observation_size, hidden_size, output_size, num_tasks):
    """Deterministic synthetic weights. Weights (in, out); biases (1, out)."""
    ks = jax.random.split(key, 8)

    def w(k, fan_in, fan_out):
        bound = 1.0 / jnp.sqrt(fan_in)
        return jax.random.uniform(k, (fan_in, fan_out), jnp.float32, -bound, bound)

    def b(k, fan_in, fan_out):
        bound = 1.0 / jnp.sqrt(fan_in)
        return jax.random.uniform(k, (1, fan_out), jnp.float32, -bound, bound)

    return {
        "wi": w(ks[0], observation_size, hidden_size),
        "bi": b(ks[1], observation_size, hidden_size),
        "wh": w(ks[2], hidden_size, hidden_size),
        "bh": b(ks[3], hidden_size, hidden_size),
        "ws": w(ks[4], num_tasks, hidden_size),
        "bs": b(ks[5], num_tasks, hidden_size),
        "wo": w(ks[6], hidden_size, output_size),
        "bo": b(ks[7], hidden_size, output_size),
    }


def reference_step(obs, h, task_ohe, p):
    pre = obs @ p["wi"] + p["bi"] + h @ p["wh"] + p["bh"] + task_ohe @ p["ws"] + p["bs"]
    rnn_h = jnp.maximum(pre, 0.0)
    out = rnn_h @ p["wo"] + p["bo"]
    return out, rnn_h


def reference_sequence(obs_seq, h0, task_ohe, p):
    outs, hs = [], []
    h = h0
    for t in range(obs_seq.shape[0]):
        out, h = reference_step(obs_seq[t], h, task_ohe, p)
        outs.append(out)
        hs.append(h)
    return jnp.stack(outs, 0), jnp.stack(hs, 0)


if __name__ == "__main__":
    observation_size, hidden_size, output_size, num_tasks = 16, 32, 8, 4
    batch, seq_len = 8, 8

    key = jax.random.PRNGKey(0)
    k_obs, k_h, k_task, k_params = jax.random.split(key, 4)

    obs_seq = jax.random.normal(k_obs, (seq_len, batch, observation_size), jnp.float32)
    h0 = jax.random.normal(k_h, (batch, hidden_size), jnp.float32)
    task_idx = jax.random.randint(k_task, (batch,), 0, num_tasks)
    task_ohe = jax.nn.one_hot(task_idx, num_tasks, dtype=jnp.float32)

    params = init_params(k_params, observation_size, hidden_size, output_size, num_tasks)
    packed = pack_params(params)  # packed ONCE, outside the forward path

    # Full-sequence forward (time loop inside the kernel).
    out_seq, h_seq = task_switcher_forward_sequence(obs_seq, h0, task_ohe, packed)
    out_seq = jax.block_until_ready(out_seq)
    h_seq = jax.block_until_ready(h_seq)

    out_ref, h_ref = reference_sequence(obs_seq, h0, task_ohe, params)
    assert jnp.allclose(out_seq, out_ref, atol=1e-4, rtol=1e-4)
    assert jnp.allclose(h_seq, h_ref, atol=1e-4, rtol=1e-4)

    # Single-step forward (module's forward()) via the same kernel with T=1.
    out1, h1 = task_switcher_forward(obs_seq[0], h0, task_ohe, packed)
    out1 = jax.block_until_ready(out1)
    h1 = jax.block_until_ready(h1)
    out1_ref, h1_ref = reference_step(obs_seq[0], h0, task_ohe, params)
    assert jnp.allclose(out1, out1_ref, atol=1e-4, rtol=1e-4)
    assert jnp.allclose(h1, h1_ref, atol=1e-4, rtol=1e-4)

    print("KERNEL_OK")
</pallas_src>

<mosaic_0001>
module attributes {stable_mosaic.version = 11 : i64} {
  func.func @_seq_kernel(%arg0: i32, %arg1: memref<1x8x16xf32, #tpu.memory_space<vmem>>, %arg2: memref<8x4xf32, #tpu.memory_space<vmem>>, %arg3: memref<8x32xf32, #tpu.memory_space<vmem>>, %arg4: memref<16x32xf32, #tpu.memory_space<vmem>>, %arg5: memref<32x32xf32, #tpu.memory_space<vmem>>, %arg6: memref<4x32xf32, #tpu.memory_space<vmem>>, %arg7: memref<32x8xf32, #tpu.memory_space<vmem>>, %arg8: memref<1x32xf32, #tpu.memory_space<vmem>>, %arg9: memref<1x8xf32, #tpu.memory_space<vmem>>, %arg10: memref<1x8x8xf32, #tpu.memory_space<vmem>>, %arg11: memref<1x8x32xf32, #tpu.memory_space<vmem>>, %arg12: memref<8x32xf32, #tpu.memory_space<vmem>>, %arg13: memref<8x32xf32, #tpu.memory_space<vmem>>) attributes {dimension_semantics = [#tpu.dimension_semantics<arbitrary>], iteration_bounds = array<i64: 8>, scalar_prefetch = 0 : i64, scratch_operands = 2 : i64, tpu.core_type = #tpu.core_type<tc>, window_params = [{transform_indices = @transform_0, window_bounds = array<i64: 1, 8, 16>}, {pipeline_mode = #tpu.pipeline_mode<synchronous>, transform_indices = @transform_1, window_bounds = array<i64: 8, 4>}, {pipeline_mode = #tpu.pipeline_mode<synchronous>, transform_indices = @transform_2, window_bounds = array<i64: 8, 32>}, {pipeline_mode = #tpu.pipeline_mode<synchronous>, transform_indices = @transform_3, window_bounds = array<i64: 16, 32>}, {pipeline_mode = #tpu.pipeline_mode<synchronous>, transform_indices = @transform_4, window_bounds = array<i64: 32, 32>}, {pipeline_mode = #tpu.pipeline_mode<synchronous>, transform_indices = @transform_5, window_bounds = array<i64: 4, 32>}, {pipeline_mode = #tpu.pipeline_mode<synchronous>, transform_indices = @transform_6, window_bounds = array<i64: 32, 8>}, {pipeline_mode = #tpu.pipeline_mode<synchronous>, transform_indices = @transform_7, window_bounds = array<i64: 1, 32>}, {pipeline_mode = #tpu.pipeline_mode<synchronous>, transform_indices = @transform_8, window_bounds = array<i64: 1, 8>}, {transform_indices = @transform_9, window_bounds = array<i64: 1, 8, 8>}, {transform_indices = @transform_10, window_bounds = array<i64: 1, 8, 32>}]} {
    %c0_i32 = arith.constant 0 : i32
    %0 = arith.cmpi eq, %arg0, %c0_i32 : i32
    %1 = arith.extui %0 : i1 to i32
    %c0_i32_0 = arith.constant 0 : i32
    %2 = arith.cmpi ne, %1, %c0_i32_0 : i32
    scf.if %2 {
      %c0_26 = arith.constant 0 : index
      %c0_27 = arith.constant 0 : index
      %27 = vector.load %arg3[%c0_26, %c0_27] : memref<8x32xf32, #tpu.memory_space<vmem>>, vector<8x32xf32>
      %c0_28 = arith.constant 0 : index
      %c0_29 = arith.constant 0 : index
      %28 = vector.load %arg12[%c0_28, %c0_29] : memref<8x32xf32, #tpu.memory_space<vmem>>, vector<8x32xf32>
      tpu.vector_store %arg12[%c0_28, %c0_29], %27 {strides = array<i32>} : memref<8x32xf32, #tpu.memory_space<vmem>>, vector<8x32xf32>,
      %c0_30 = arith.constant 0 : index
      %c0_31 = arith.constant 0 : index
      %29 = vector.load %arg2[%c0_30, %c0_31] : memref<8x4xf32, #tpu.memory_space<vmem>>, vector<8x4xf32>
      %c0_32 = arith.constant 0 : index
      %c0_33 = arith.constant 0 : index
      %30 = vector.load %arg6[%c0_32, %c0_33] : memref<4x32xf32, #tpu.memory_space<vmem>>, vector<4x32xf32>
      %cst_34 = arith.constant dense<0.000000e+00> : vector<8x32xf32>
      %31 = tpu.matmul %29, %30, %cst_34 {dimension_numbers = #tpu.dot_dimension_numbers<[1], [0], [0], [1], [0, 0, 1, 1], [], []>} : vector<8x4xf32>, vector<4x32xf32>, vector<8x32xf32> -> vector<8x32xf32>
      %c0_35 = arith.constant 0 : index
      %c0_36 = arith.constant 0 : index
      %32 = vector.load %arg8[%c0_35, %c0_36] : memref<1x32xf32, #tpu.memory_space<vmem>>, vector<1x32xf32>
      %33 = vector.broadcast %32 : vector<1x32xf32> to vector<8x32xf32>
      %34 = arith.addf %31, %33 : vector<8x32xf32>
      %c0_37 = arith.constant 0 : index
      %c0_38 = arith.constant 0 : index
      %35 = vector.load %arg13[%c0_37, %c0_38] : memref<8x32xf32, #tpu.memory_space<vmem>>, vector<8x32xf32>
      tpu.vector_store %arg13[%c0_37, %c0_38], %34 {strides = array<i32>} : memref<8x32xf32, #tpu.memory_space<vmem>>, vector<8x32xf32>,
    } else {
    }
    %c0 = arith.constant 0 : index
    %c0_1 = arith.constant 0 : index
    %c0_2 = arith.constant 0 : index
    %3 = vector.load %arg1[%c0, %c0_1, %c0_2] : memref<1x8x16xf32, #tpu.memory_space<vmem>>, vector<1x8x16xf32>
    %4 = vector.shape_cast %3 : vector<1x8x16xf32> to vector<8x16xf32>
    %c0_3 = arith.constant 0 : index
    %c0_4 = arith.constant 0 : index
    %5 = vector.load %arg4[%c0_3, %c0_4] : memref<16x32xf32, #tpu.memory_space<vmem>>, vector<16x32xf32>
    %cst = arith.constant dense<0.000000e+00> : vector<8x32xf32>
    %6 = tpu.matmul %4, %5, %cst {dimension_numbers = #tpu.dot_dimension_numbers<[1], [0], [0], [1], [0, 0, 1, 1], [], []>} : vector<8x16xf32>, vector<16x32xf32>, vector<8x32xf32> -> vector<8x32xf32>
    %c0_5 = arith.constant 0 : index
    %c0_6 = arith.constant 0 : index
    %7 = vector.load %arg12[%c0_5, %c0_6] : memref<8x32xf32, #tpu.memory_space<vmem>>, vector<8x32xf32>
    %c0_7 = arith.constant 0 : index
    %c0_8 = arith.constant 0 : index
    %8 = vector.load %arg5[%c0_7, %c0_8] : memref<32x32xf32, #tpu.memory_space<vmem>>, vector<32x32xf32>
    %cst_9 = arith.constant dense<0.000000e+00> : vector<8x32xf32>
    %9 = tpu.matmul %7, %8, %cst_9 {dimension_numbers = #tpu.dot_dimension_numbers<[1], [0], [0], [1], [0, 0, 1, 1], [], []>} : vector<8x32xf32>, vector<32x32xf32>, vector<8x32xf32> -> vector<8x32xf32>
    %10 = arith.addf %6, %9 : vector<8x32xf32>
    %c0_10 = arith.constant 0 : index
    %c0_11 = arith.constant 0 : index
    %11 = vector.load %arg13[%c0_10, %c0_11] : memref<8x32xf32, #tpu.memory_space<vmem>>, vector<8x32xf32>
    %12 = arith.addf %10, %11 : vector<8x32xf32>
    %cst_12 = arith.constant 0.000000e+00 : f32
    %13 = vector.broadcast %cst_12 : f32 to vector<8x32xf32>
    %14 = arith.maximumf %12, %13 : vector<8x32xf32>
    %c0_13 = arith.constant 0 : index
    %c0_14 = arith.constant 0 : index
    %15 = vector.load %arg12[%c0_13, %c0_14] : memref<8x32xf32, #tpu.memory_space<vmem>>, vector<8x32xf32>
    tpu.vector_store %arg12[%c0_13, %c0_14], %14 {strides = array<i32>} : memref<8x32xf32, #tpu.memory_space<vmem>>, vector<8x32xf32>,
    %c0_15 = arith.constant 0 : index
    %c0_16 = arith.constant 0 : index
    %c0_17 = arith.constant 0 : index
    %16 = vector.load %arg11[%c0_15, %c0_16, %c0_17] : memref<1x8x32xf32, #tpu.memory_space<vmem>>, vector<1x8x32xf32>
    %17 = vector.shape_cast %16 : vector<1x8x32xf32> to vector<8x32xf32>
    %18 = vector.shape_cast %14 : vector<8x32xf32> to vector<1x8x32xf32>
    tpu.vector_store %arg11[%c0_15, %c0_16, %c0_17], %18 {strides = array<i32>} : memref<1x8x32xf32, #tpu.memory_space<vmem>>, vector<1x8x32xf32>,
    %c0_18 = arith.constant 0 : index
    %c0_19 = arith.constant 0 : index
    %19 = vector.load %arg7[%c0_18, %c0_19] : memref<32x8xf32, #tpu.memory_space<vmem>>, vector<32x8xf32>
    %cst_20 = arith.constant dense<0.000000e+00> : vector<8x8xf32>
    %20 = tpu.matmul %14, %19, %cst_20 {dimension_numbers = #tpu.dot_dimension_numbers<[1], [0], [0], [1], [0, 0, 1, 1], [], []>} : vector<8x32xf32>, vector<32x8xf32>, vector<8x8xf32> -> vector<8x8xf32>
    %c0_21 = arith.constant 0 : index
    %c0_22 = arith.constant 0 : index
    %21 = vector.load %arg9[%c0_21, %c0_22] : memref<1x8xf32, #tpu.memory_space<vmem>>, vector<1x8xf32>
    %22 = vector.broadcast %21 : vector<1x8xf32> to vector<8x8xf32>
    %23 = arith.addf %20, %22 : vector<8x8xf32>
    %c0_23 = arith.constant 0 : index
    %c0_24 = arith.constant 0 : index
    %c0_25 = arith.constant 0 : index
    %24 = vector.load %arg10[%c0_23, %c0_24, %c0_25] : memref<1x8x8xf32, #tpu.memory_space<vmem>>, vector<1x8x8xf32>
    %25 = vector.shape_cast %24 : vector<1x8x8xf32> to vector<8x8xf32>
    %26 = vector.shape_cast %23 : vector<8x8xf32> to vector<1x8x8xf32>
    tpu.vector_store %arg10[%c0_23, %c0_24, %c0_25], %26 {strides = array<i32>} : memref<1x8x8xf32, #tpu.memory_space<vmem>>, vector<1x8x8xf32>,
    return
  }
  func.func @transform_0(%arg0: i32) -> (i32, i32, i32) {
    %c0_i32 = arith.constant 0 : i32
    %c0_i32_0 = arith.constant 0 : i32
    %c0_i32_1 = arith.constant 0 : i32
    return %arg0, %c0_i32, %c0_i32_0 : i32, i32, i32
  }
  func.func @transform_1(%arg0: i32) -> (i32, i32) {
    %c0_i32 = arith.constant 0 : i32
    %c0_i32_0 = arith.constant 0 : i32
    %c0_i32_1 = arith.constant 0 : i32
    return %c0_i32, %c0_i32_0 : i32, i32
  }
  func.func @transform_2(%arg0: i32) -> (i32, i32) {
    %c0_i32 = arith.constant 0 : i32
    %c0_i32_0 = arith.constant 0 : i32
    %c0_i32_1 = arith.constant 0 : i32
    return %c0_i32, %c0_i32_0 : i32, i32
  }
  func.func @transform_3(%arg0: i32) -> (i32, i32) {
    %c0_i32 = arith.constant 0 : i32
    %c0_i32_0 = arith.constant 0 : i32
    %c0_i32_1 = arith.constant 0 : i32
    return %c0_i32, %c0_i32_0 : i32, i32
  }
  func.func @transform_4(%arg0: i32) -> (i32, i32) {
    %c0_i32 = arith.constant 0 : i32
    %c0_i32_0 = arith.constant 0 : i32
    %c0_i32_1 = arith.constant 0 : i32
    return %c0_i32, %c0_i32_0 : i32, i32
  }
  func.func @transform_5(%arg0: i32) -> (i32, i32) {
    %c0_i32 = arith.constant 0 : i32
    %c0_i32_0 = arith.constant 0 : i32
    %c0_i32_1 = arith.constant 0 : i32
    return %c0_i32, %c0_i32_0 : i32, i32
  }
  func.func @transform_6(%arg0: i32) -> (i32, i32) {
    %c0_i32 = arith.constant 0 : i32
    %c0_i32_0 = arith.constant 0 : i32
    %c0_i32_1 = arith.constant 0 : i32
    return %c0_i32, %c0_i32_0 : i32, i32
  }
  func.func @transform_7(%arg0: i32) -> (i32, i32) {
    %c0_i32 = arith.constant 0 : i32
    %c0_i32_0 = arith.constant 0 : i32
    %c0_i32_1 = arith.constant 0 : i32
    return %c0_i32, %c0_i32_0 : i32, i32
  }
  func.func @transform_8(%arg0: i32) -> (i32, i32) {
    %c0_i32 = arith.constant 0 : i32
    %c0_i32_0 = arith.constant 0 : i32
    %c0_i32_1 = arith.constant 0 : i32
    return %c0_i32, %c0_i32_0 : i32, i32
  }
  func.func @transform_9(%arg0: i32) -> (i32, i32, i32) {
    %c0_i32 = arith.constant 0 : i32
    %c0_i32_0 = arith.constant 0 : i32
    %c0_i32_1 = arith.constant 0 : i32
    return %arg0, %c0_i32, %c0_i32_0 : i32, i32, i32
  }
  func.func @transform_10(%arg0: i32) -> (i32, i32, i32) {
    %c0_i32 = arith.constant 0 : i32
    %c0_i32_0 = arith.constant 0 : i32
    %c0_i32_1 = arith.constant 0 : i32
    return %arg0, %c0_i32, %c0_i32_0 : i32, i32, i32
  }
}

</mosaic_0001>

<bundles_post_ra>
// kernel: task_switcher_forward_sequence.1
= control target key start
LH: loop header
LB: loop body
LE: loop exit
PB: predicated region body
PF: predicated region fallthrough
CT: control target
= control target key end

     0   :  { %s1207_s0 = inlined_call_operand.hbm [shape: f32[8,8,16], index: 0, kind: input, shape index: {}]   ;;  %s1208_s1 = inlined_call_operand.vmem [shape: f32[8,4], index: 1, kind: input, shape index: {}]   ;;  %s1209_s2 = inlined_call_operand.vmem [shape: f32[8,32], index: 2, kind: input, shape index: {}]   ;;  %s1210_s3 = inlined_call_operand.hbm [shape: f32[16,32], index: 3, kind: input, shape index: {}]   ;;  %s1211_s4 = inlined_call_operand.vmem [shape: f32[32,32], index: 4, kind: input, shape index: {}]   ;;  %s1212_s5 = inlined_call_operand.vmem [shape: f32[4,32], index: 5, kind: input, shape index: {}]   ;;  %s1213_s6 = inlined_call_operand.vmem [shape: f32[32,8], index: 6, kind: input, shape index: {}]   ;;  %s1214_s7 = inlined_call_operand.vmem [shape: f32[1,32], index: 7, kind: input, shape index: {}]   ;;  %s1215_s8 = inlined_call_operand.vmem [shape: f32[1,8], index: 8, kind: input, shape index: {}]   ;;  %s1216_s9 = inlined_call_operand.hbm [shape: f32[8,8,8], index: 9, kind: output, shape index: {0}]   ;;  %s1217_s10 = inlined_call_operand.hbm [shape: f32[8,8,32], index: 10, kind: output, shape index: {1}]  }
   0x1   :  { %1221 = sst [smem:[#allocation19_spill]] %s1210_s3 }
   0x2   :  { %16 = vsyncpa [#allocation5], 0 }
   0x3   :  { %18 = vsyncpa [#allocation5 + $0x1], 0 }
   0x4   :  { %19 = vsyncpa [#allocation8], 0 }
   0x5   :  { %20 = vsyncpa [#allocation6], 0 }
   0x6   :  { %22 = vsyncpa [#allocation6 + $0x1], 0 }
   0x7   :  { %23 = vsyncpa [#allocation11], 0 }
   0x8   :  { %25 = vsyncpa [#allocation11 + $0x1], 0  ;;  %s1000_s13 = smov 0   ;;  %s1002_s14 = smov 0  }
   0x9   :  { %s1004_s15 = smov 0   ;;  %s1006_s16 = smov 0  }
   0xa LB: > { %1222 = sst [smem:[#allocation16_spill]] %s936_s15  ;;  %s1024_s20 = sadd.s32 4294967295, %s940_s16   ;;  %s940_s16 = sphi %s1006_s16, %s1234_s16   ;;  %s936_s15 = sphi %s1004_s15, %s1236_s15   ;;  %s932_s14 = sphi %s1002_s14, %s1238_s14   ;;  %s928_s13 = sphi %s1000_s13, %s1237_s13  }
   0xb   : > { %s1223_s3 = sld [smem:[#allocation19_spill]]  ;;  %p690_p0 = scmp.ge.s32.totalorder %s940_s16, 1 }
   0xc   : > { %p52_p1 = scmp.eq.s32.totalorder %s1024_s20, 0  ;;  %p282_p2 = scmp.lt.s32.totalorder %s940_s16, 9 }
   0xd   : > { %s942_s22 = smov [#allocation7]   ;;  %s943_s24 = smov 128  }
   0xe   : > { %p1030_p4 = pnand %p690_p0, %p282_p2  ;;  %s301_s23 = sshll.u32 %s942_s22, 4  ;;  %s302_s23 = int_to_ptr.vmem [resolvable:$true] %s301_s23 }
   0xf   : > { %s944_s25 = smov 8   ;;  %s689_s26 = sadd.s32 4294967294, %s940_s16  }
  0x10   : > { %p722_p5 = pneg %p1030_p4  ;;  %s1040_s27 = sadd.s32 1, %s940_s16  }
  0x11   : > { %s299_s19 = sshll.u32 %s1223_s3, 4  ;;  %1225 = sst [smem:[#allocation17_spill]] %s1040_s27  ;;  %s300_s19 = int_to_ptr.hbm [resolvable:$true] %s299_s19 }
  0x12   : > { %p723_p6 = pnand %p722_p5, %p52_p1  ;;  %s38_s28 = sadd.s32 1, %s936_s15 }
  0x13   : > { %s35_s29 = ssub.s32 %s940_s16, %s1040_s27  ;;  %p45_p7 = scmp.ne.s32.totalorder %s936_s15, %s932_s14 }
  0x14   : > { %725 = dma.hbm_to_vmem [thread:$0]  (!%p723_p6), %s300_s19, 256, %s302_s23, [#allocation8], %s943_s24, %s943_s24, %s944_s25  }
  0x15   : > { %p36_p8 = scmp.eq.s32.totalorder %s35_s29, 0  ;;  %p46_p9 = scmp.eq.s32.totalorder %s940_s16, 0 }
  0x16   : > { %p51_p10 = scmp.ne.s32.totalorder %s932_s14, %s928_s13  ;;  %p243_p11 = scmp.eq.s32.totalorder %s1024_s20, 7 }
  0x17   : > { %s1052_s30 = scalar_select %p36_p8, %s936_s15, %s38_s28  }
  0x18   : > { %p1056_p12 = por %p52_p1, %p51_p10  ;;  %p1060_p13 = por %p243_p11, %p45_p7 }
  0x19   : > { %1226 = sst [smem:[#allocation18_spill]] %s1052_s30  ;;  %p249_p0 = scmp.eq.s32.totalorder %s689_s26, 7 }
  0x1a   : > { %p47_p2 = por %p46_p9, %p45_p7  ;;  %s330_s17 = sand.u32 1, %s936_s15  }
  0x1b   : > { %p1065_p5 = por %p249_p0, %p51_p10  ;;  %p738_p6 = scmp.lt.s32.totalorder %s940_s16, 8 }
  0x1c   : > { %s693_s19 = sshll.u32 %s330_s17, 3  ;;  %s694_s22 = sshll.u32 %s940_s16, 3 }
  0x1d   : > { %s338_s25 = scalar_lea.hbm %s1207_s0, %s694_s22  ;;  %s334_s29 = scalar_lea.vmem [#allocation4], %s693_s19 }
  0x1e   : > { %s340_s28 = sshll.u32 %s338_s25, 4  ;;  %s342_s3 = sshll.u32 %s334_s29, 4  ;;  %s341_s28 = int_to_ptr.hbm [resolvable:$true] %s340_s28  ;;  %s343_s3 = int_to_ptr.vmem [resolvable:$true] %s342_s3 }
  0x1f   : > { %p1074_p8 = pnand %p738_p6, %p47_p2  ;;  %s331_s30 = scalar_lea.sflag [#allocation5], %s330_s17 }
  0x20   : > { %s808_s15 = sshra.s32 %s341_s28, 4  ;;  %s815_s19 = scalar_lea.hbm %s1207_s0, 64  ;;  %s809_s15 = int_to_ptr.hbm [resolvable:$true] %s808_s15 }
  0x21   : > { %s810_s27 = scalar_lea.hbm %s809_s15, 8  ;;  %p812_p9 = pneg %p1074_p8 }
  0x22   : > { %p811_p7 = scmp.ne.s32.totalorder %s809_s15, %s810_s27  ;;  %p816_p0 = scmp.lt.s32.totalorder %s809_s15, %s1207_s0 }
  0x23   : > { %p817_p2 = scmp.lt.s32.totalorder %s815_s19, %s810_s27 }
  0x24   : > { %p813_p10 = pnand %p812_p9, %p811_p7 }
  0x25   : > { %p818_p6 = por %p817_p2, %p816_p0 }
  0x26   : > { %p814_p11 = pneg %p813_p10 }
  0x28   : > { %p819_p3 = pnand %p818_p6, %p814_p11 }
  0x2a   : > { %822 = shalt.err (!%p819_p3)
}
  0x2b   : > { %729 = dma.hbm_to_vmem [thread:$0]  (!%p1074_p8), %s341_s28, 128, %s343_s3, %s331_s30  }
  0x2c   : > { %351 = sbr.rel (%p1030_p4) target bundleno = 467 (0x1d3), region = 56  ;;  %s1091_s17 = sand.u32 (!%p1030_p4), 1, %s932_s14  }
  0x2d   : > { %s1094_s29 = sshll.u32 (!%p1030_p4), %s1091_s17, 3  ;;  %s354_s15 = scalar_lea.sflag (!%p1030_p4), [#allocation5], %s1091_s17 }
  0x2e   : > { %s357_s27 = scalar_lea.vmem (!%p1030_p4), [#allocation4], %s1094_s29 }
  0x31   : > { %911 = dma.done.wait (%p1056_p12), %s354_s15, 128  }
  0x32   : > { %913 = vsyncadd (%p1056_p12), %s354_s15, 4294967168 }
  0x33   : > { %915 = dma.done.wait (%p52_p1), [#allocation8], 256  }
  0x34   : > { %917 = vsyncadd (%p52_p1), [#allocation8], 4294967040  ;;  %s404_s21 = scalar_lea.vmem [#allocation10], %s1094_s29  ;;  %p1231_p3 = scmp.ne.s32.totalorder %s1024_s20, 0 }
  0x36   : > { %408 = sbr.rel (%p1231_p3) target bundleno = 190 (0xbe), region = 68 }
  0x3b   : > { %v413_v0 = vld [vmem:[%s1212_s5] sm:$0xf]  ;;  %vm422_vm0 = vcmask 1043456   ;;  %vm418_vm1 = vcmask 31744   ;;  %vm410_vm2 = vcmask 261120  }
  0x3c   : > { %v412_v1 = vld [vmem:[%s1208_s1] sm:$0xff]  ;;  %701 = vmatpush.msk.msra.mxu0 %vm422_vm0, %v413_v0 }
  0x3d   : > { %v409_v2 = vld [vmem:[%s1209_s2] sm:$0xff]  ;;  %702 = vmatmul.msk.f32.vlgmr.msra.gmra.mxu0 %vm418_vm1, %v412_v1 }
  0x3e   : > { %411 = vst.msk [vmem:[#allocation2] sm:$0xff] %vm410_vm2, %v409_v2  ;;  %v776_v3 = vld [vmem:[%s1214_s7] ss:$0 sm:$0xff] }
  0xba   : > { %v443_v4 = vpop.f32.mrf.mxu0 }
  0xbb   : > { %v444_v5 = vadd.f32 %v776_v3, %v443_v4 }
  0xbd   : > { %446 = vst.msk [vmem:[#allocation3] sm:$0xff] %vm410_vm2, %v444_v5 }
  0xbe PF: > { %v454_v6 = vld [vmem:[%s1211_s4 + $0x18] sm:$0xff]  ;;  %v453_v7 = vld [vmem:[%s1211_s4 + $0x10] sm:$0xff]  ;;  %v449_v8 = vld [vmem:[#allocation7 + $0x8] sm:$0xff]  ;;  %vm479_vm3 = vcmask 130048   ;;  %vm455_vm4 = vcmask 261120   ;;  %s708_s26 = sshll.u32 %s1024_s20, 3 }
  0xbf   : > { %471 = vmatpush.msra.mxu0 %v454_v6  ;;  %v448_v9 = vld [vmem:[#allocation7] sm:$0xff]  ;;  %v452_v10 = vld [vmem:[%s1211_s4 + $0x8] sm:$0xff]  ;;  %497 = vmatpush.msra.mxu1 %v449_v8  ;;  %v447_v11 = vld [vmem:[%s357_s27] sm:$0xff]  ;;  %s571_s19 = scalar_lea.hbm %s1217_s10, %s708_s26  ;;  %s573_s24 = sshll.u32 %s404_s21, 4  ;;  %s574_s24 = int_to_ptr.vmem [resolvable:$true] %s573_s24 }
  0xc0   : > { %v451_v12 = vld [vmem:[%s1211_s4] sm:$0xff]  ;;  %v511_v14 = vld [vmem:[%s1213_s6 + $0x18] sm:$0xff]  ;;  %v510_v15 = vld [vmem:[%s1213_s6 + $0x10] sm:$0xff]  ;;  %s575_s27 = sshll.u32 %s571_s19, 4  ;;  %s547_s25 = scalar_lea.sflag [#allocation11], %s1091_s17  ;;  %s576_s27 = int_to_ptr.hbm [resolvable:$true] %s575_s27 }
  0xc1   : > { %472 = vmatpush.msra.mxu0 %v453_v7  ;;  %498 = vmatpush.msra.mxu1 %v448_v9  ;;  %v450_v13 = vld [vmem:[#allocation2] sm:$0xff]  ;;  %v509_v16 = vld [vmem:[%s1213_s6 + $0x8] sm:$0xff]  ;;  %s852_s15 = sshra.s32 %s576_s27, 4  ;;  %s858_s20 = scalar_lea.hbm %s1217_s10, 64  ;;  %s853_s15 = int_to_ptr.hbm [resolvable:$true] %s852_s15 }
  0xc2   : > { %704 = vmatmul.msk.f32.vlgmr.msra.gmra.mxu1 %vm479_vm3, %v447_v11  ;;  %531 = vmatpush.msra.mxu2 %v511_v14  ;;  %v508_v17 = vld [vmem:[%s1213_s6] sm:$0xff]  ;;  %s854_s30 = scalar_lea.hbm %s853_s15, 8  ;;  %p859_p8 = scmp.lt.s32.totalorder %s853_s15, %s1217_s10 }
  0xc3   : > { %473 = vmatpush.msra.mxu0 %v452_v10  ;;  %p855_p1 = scmp.ne.s32.totalorder %s853_s15, %s854_s30  ;;  %p860_p7 = scmp.lt.s32.totalorder %s858_s20, %s854_s30 }
  0xc4   : > { %532 = vmatpush.msra.mxu2 %v510_v15  ;;  %v503_v20 = vld [vmem:[#allocation3] sm:$0xff] }
  0xc5   : > { %474 = vmatpush.msra.mxu0 %v451_v12  ;;  %p856_p4 = pnand %p855_p1, %p1060_p13  ;;  %p861_p9 = por %p860_p7, %p859_p8 }
  0xc6   : > { %703 = vmatmul.msk.f32.vlgmr.msra.gmra.mxu0 %vm455_vm4, %v450_v13  ;;  %533 = vmatpush.msra.mxu2 %v509_v16 }
  0xc7   : > { %p857_p12 = pneg %p856_p4 }
  0xc8   : > { %534 = vmatpush.msra.mxu2 %v508_v17 }
  0xc9   : > { %p862_p10 = pnand %p861_p9, %p857_p12 }
 0x13f   : > { %v500_v18 = vpop.f32.mrf.mxu1 }
 0x143   : > { %v476_v19 = vpop.f32.mrf.mxu0 }
 0x144   : > { %v501_v21 = vadd.f32 %v500_v18, %v476_v19 }
 0x146   : > { %v504_v22 = vadd.f32 %v503_v20, %v501_v21 }
 0x148   : > { %v505_v23 = vmax.f32 %v504_v22, 0.0 }
 0x14a   : > { %506 = vst.msk [vmem:[#allocation2] sm:$0xff] %vm455_vm4, %v505_v23  ;;  %705 = vmatmul.msk.f32.vlgmr.msra.gmra.mxu2 %vm455_vm4, %v505_v23 }
 0x14b   : > { %507 = vst.msk [vmem:[%s404_s21] sm:$0xff] %vm455_vm4, %v505_v23 }
 0x14c   : > { %865 = shalt.err (!%p862_p10)
}
 0x14d   : > { %719 = dma.vmem_to_hbm [thread:$0]  (%p1060_p13), %s574_s24, 128, %s576_s27, %s547_s25   ;;  %v777_v24 = vld [vmem:[%s1215_s8] ss:$0 sm:$0xff]  ;;  %vm539_vm5 = vcmask 64512  }
 0x14e   : > { %s557_s19 = scalar_lea.hbm %s1216_s9, %s708_s26  ;;  %s1232_s3 = scalar_lea.vmem [#allocation9], %s1094_s29 }
 0x14f   : > { %s559_s15 = sshll.u32 %s1232_s3, 4  ;;  %s561_s30 = sshll.u32 %s557_s19, 4  ;;  %s560_s15 = int_to_ptr.vmem [resolvable:$true] %s559_s15  ;;  %s562_s30 = int_to_ptr.hbm [resolvable:$true] %s561_s30 }
 0x150   : > { %s1233_s20 = smov %s1232_s3  ;;  %s542_s24 = scalar_lea.sflag [#allocation6], %s1091_s17 }
 0x151   : > { %s880_s27 = sshra.s32 %s562_s30, 4  ;;  %s886_s21 = scalar_lea.hbm %s1216_s9, 64  ;;  %s881_s27 = int_to_ptr.hbm [resolvable:$true] %s880_s27 }
 0x152   : > { %s882_s25 = scalar_lea.hbm %s881_s27, 8  ;;  %p887_p6 = scmp.lt.s32.totalorder %s881_s27, %s1216_s9 }
 0x153   : > { %p883_p11 = scmp.ne.s32.totalorder %s881_s27, %s882_s25  ;;  %p888_p3 = scmp.lt.s32.totalorder %s886_s21, %s882_s25 }
 0x155   : > { %p884_p0 = pnand %p883_p11, %p1060_p13  ;;  %p889_p1 = por %p888_p3, %p887_p6 }
 0x157   : > { %p885_p2 = pneg %p884_p0 }
 0x159   : > { %p890_p4 = pnand %p889_p1, %p885_p2 }
 0x1cd   : > { %v536_v25 = vpop.f32.mrf.mxu2 }
 0x1ce   : > { %v537_v26 = vadd.f32 %v777_v24, %v536_v25 }
 0x1d0   : > { %540 = vst.msk [vmem:[%s1233_s20] sm:$0xff] %vm539_vm5, %v537_v26 }
 0x1d1   : > { %893 = shalt.err (!%p890_p4)
}
 0x1d2   : > { %718 = dma.vmem_to_hbm [thread:$0]  (%p1060_p13), %s560_s15, 128, %s562_s30, %s542_s24  }
 0x1d3 PF: > { %p740_p12 = scmp.ge.s32.totalorder %s940_s16, 2  ;;  %s587_s17 = sand.u32 1, %s928_s13  }
 0x1d4   : > { %s588_s29 = scalar_lea.sflag [#allocation6], %s587_s17 }
 0x1d5   : > { %p731_p8 = pnand %p740_p12, %p1065_p5 }
 0x1d7   : > { %p732_p7 = pneg %p731_p8 }
 0x1d9   : > { %919 = dma.done.wait (%p732_p7), %s588_s29, 128  }
 0x1da   : > { %921 = vsyncadd (%p732_p7), %s588_s29, 4294967168  ;;  %s598_s28 = scalar_lea.sflag [#allocation11], %s587_s17 }
 0x1db   : > { %923 = dma.done.wait (%p732_p7), %s598_s28, 128  }
 0x1dc   : > { %925 = vsyncadd (%p732_p7), %s598_s28, 4294967168  ;;  %s1234_s16 = sld [smem:[#allocation17_spill]]  ;;  %s1237_s13 = smov %s932_s14 }
 0x1dd   : > { %s1235_s11 = sld [smem:[#allocation16_spill]] }
 0x1de   : > { %s1236_s15 = sld [smem:[#allocation18_spill]] }
 0x1e2   : > { %p28_p13 = scmp.ge.s32.totalorder %s1234_s16, 10  }
 0x1e3   : > { %s1238_s14 = smov %s1235_s11 }
 0x1e4   :  { %30 = sbr.rel (!%p28_p13) target bundleno = 10 (0xa), region = 126 }
 0x1e9   :  { %604 = vsyncpa [#allocation5], 1 }
 0x1ea   :  { %606 = vsyncpa [#allocation5 + $0x1], 1 }
 0x1eb   :  { %607 = vsyncpa [#allocation8], 1 }
 0x1ec   :  { %608 = vsyncpa [#allocation6], 1 }
 0x1ed   :  { %610 = vsyncpa [#allocation6 + $0x1], 1 }
 0x1ee   :  { %611 = vsyncpa [#allocation11], 1 }
 0x1ef   :  { %613 = vsyncpa [#allocation11 + $0x1], 1 }

</bundles_post_ra>
